<compile_context>
chip_gen: v7x
topology: tpu7x:2x2x1
jax: 0.10.0
libtpu: 0.0.40
codegen_flags: <defaults>
</compile_context>

<pallas_src>
import functools

import jax
import jax.numpy as jnp
import numpy as np
from jax import lax
from jax.experimental import pallas as pl
from jax.experimental.pallas import tpu as pltpu


def _make_energy_kernel(d: int, F: int, te: int, tc: int, inner_axis: int):
    """Kernel over one (te,)-edge block. Lane axis = edges.

    Operands are sliced + upcast inside an inner lane-chunk loop (tc lanes per
    chunk) so the vreg working set stays well under 64; the f32 accumulator is
    a small (F, tc) scratch updated once per chunk and reduced to a scalar
    only on the last inner grid step.
    """
    n_chunks = te // tc

    def kernel(maps_fwd_ref, maps_rev_ref, xs_ref, xt_ref, out_ref, acc_ref):
        inner = pl.program_id(inner_axis)

        @pl.when(inner == 0)
        def _():
            acc_ref[...] = jnp.zeros_like(acc_ref)

        def chunk_body(c, carry):
            c0 = pl.multiple_of(c * tc, 128)
            lane = pl.ds(c0, tc)
            acc = jnp.zeros((F, tc), jnp.float32)
            for i in range(d):
                diff = jnp.zeros((F, tc), jnp.float32)
                for j in range(d):
                    r = i * d + j
                    # (1, tc) per-edge map scalars, broadcast against (F, tc).
                    # Each map row is touched exactly once per chunk.
                    m_rev = maps_rev_ref[pl.ds(r, 1), lane].astype(jnp.float32)
                    m_fwd = maps_fwd_ref[pl.ds(r, 1), lane].astype(jnp.float32)
                    # Slice + upcast inside the loop (bounded live ranges).
                    xt_j = xt_ref[pl.ds(j * F, F), lane].astype(jnp.float32)
                    xs_j = xs_ref[pl.ds(j * F, F), lane].astype(jnp.float32)
                    # term1 - term2 is linear in j: accumulate the difference
                    # directly (one running tile instead of separate t1/t2).
                    diff = diff + (m_rev * xt_j - m_fwd * xs_j)
                acc = acc + diff * diff
            acc_ref[...] += acc
            return carry

        lax.fori_loop(0, n_chunks, chunk_body, 0, unroll=(n_chunks <= 4))

        @pl.when(inner == pl.num_programs(inner_axis) - 1)
        def _():
            out_ref[...] = jnp.sum(acc_ref[...]).reshape(1, 1, 1)

    return kernel


def _default_num_cores() -> int:
    # v7x has 2 TensorCores per chip (shard the leading "parallel" grid axis
    # across them); v5e/v6e have a single TensorCore where the extra axis
    # would just be a serial loop.
    try:
        kind = jax.devices()[0].device_kind.lower()
    except Exception:
        return 1
    return 2 if "v7" in kind else 1


def _vmem_limit_bytes(step_in_bytes: int, scratch_bytes: int) -> int:
    # ~3x the per-step input bytes (double buffering + headroom), capped at
    # 32 MiB so the 64 MiB-VMEM generation (v7x) is never starved.
    try:
        cap = min(32 << 20, int(pltpu.get_tpu_info().vmem_capacity_bytes) // 2)
    except Exception:
        cap = 32 << 20
    want = 3 * step_in_bytes + 2 * scratch_bytes + (2 << 20)
    return int(max(4 << 20, min(cap, want)))


def dirichlet_energy_pallas(restriction_maps, edge_index, rev_idx, x, *,
                            te: int = 4096, tc: int | None = None,
                            num_cores: int | None = None,
                            x_dtype=jnp.bfloat16, maps_dtype=jnp.float32):
    """restriction_maps: (E, d, d) f32; edge_index: (2, E) i32;
    rev_idx: (E,) i32 (index of the reverse directed edge); x: (N, d, F).

    x_dtype=jnp.bfloat16 halves the dominant HBM stream (kernel is
    HBM/DMA-bound); pass jnp.float32 for exact module numerics.  On v5e,
    maps_dtype=jnp.bfloat16 shaves the (small) maps stream as well.
    """
    E, d, d2 = restriction_maps.shape
    assert d == d2, "restriction maps must be (E, d, d)"
    N, d3, F = x.shape
    assert d3 == d, "x must be (N, d, F)"
    dd = d * d

    if num_cores is None:
        num_cores = _default_num_cores()
    if tc is None:
        # Keep (F, tc) f32 tiles around 8 vregs so the chunk working set
        # stays <= ~48 vregs.
        tc = max(128, min(512, ((8192 // max(F, 1)) // 128) * 128))
    te = max(te, tc)
    te = (te // tc) * tc
    assert te % 128 == 0 and tc % 128 == 0 and te % tc == 0, \
        "edge tiles must be lane-aligned (multiples of 128) and te % tc == 0"

    # Guard the feature-axis layout (review correctness concern #2): row
    # slices xt_ref[j*F:(j+1)*F] must be sublane-tile aligned.
    row_align = 16 if jnp.dtype(x_dtype).itemsize == 2 else 8
    if F % row_align != 0:
        raise ValueError(
            f"num_features={F} must be a multiple of {row_align} for "
            f"x_dtype={jnp.dtype(x_dtype).name}; pad the feature axis.")

    edge_index = edge_index.astype(jnp.int32)
    rev_idx = rev_idx.astype(jnp.int32)

    n_inner = -(-E // (num_cores * te))
    E_pad = num_cores * n_inner * te
    pad = E_pad - E

    # --- Wrapper glue (XLA): lay per-edge operands out with edges on the
    # lane axis.  Cast BEFORE the gather, gather from pre-transposed layouts,
    # and fold edge padding into the gathers (no full-array pad passes).
    # Padded edges receive all-zero restriction maps (out-of-range "fill"
    # gather), so their contribution to the loss is exactly 0 regardless of
    # which x columns the padded gather indices pick up. ---
    maps_T = restriction_maps.reshape(E, dd).T.astype(maps_dtype)   # (dd, E)
    if pad:
        rev_idx_p = jnp.concatenate(
            [rev_idx, jnp.full((pad,), E, jnp.int32)])               # OOB -> 0
        src_idx = jnp.concatenate(
            [edge_index[0], jnp.zeros((pad,), jnp.int32)])
        tgt_idx = jnp.concatenate(
            [edge_index[1], jnp.zeros((pad,), jnp.int32)])
        maps_fwd = jnp.pad(maps_T, ((0, 0), (0, pad)))  # tiny (dd, E) stream
    else:
        rev_idx_p, src_idx, tgt_idx, maps_fwd = (
            rev_idx, edge_index[0], edge_index[1], maps_T)
    maps_rev = jnp.take(maps_T, rev_idx_p, axis=1, mode="fill",
                        fill_value=0.0)                               # (dd, E_pad)

    xT = x.astype(x_dtype).reshape(N, d * F).T                        # (d*F, N)
    x_src = jnp.take(xT, src_idx, axis=1)                             # (d*F, E_pad)
    x_tgt = jnp.take(xT, tgt_idx, axis=1)                             # (d*F, E_pad)

    if num_cores > 1:
        grid = (num_cores, n_inner)
        inner_axis = 1
        edge_map = lambda p, e: (0, p * n_inner + e)
        out_map = lambda p, e: (p, 0, 0)
        dims = ("parallel", "arbitrary")
    else:
        grid = (n_inner,)
        inner_axis = 0
        edge_map = lambda e: (0, e)
        out_map = lambda e: (0, 0, 0)
        dims = ("arbitrary",)

    kernel = _make_energy_kernel(d, F, te, tc, inner_axis)

    maps_isz = jnp.dtype(maps_dtype).itemsize
    x_isz = jnp.dtype(x_dtype).itemsize
    step_in_bytes = te * (2 * dd * maps_isz + 2 * d * F * x_isz)
    scratch_bytes = F * tc * 4
    vmem_limit = _vmem_limit_bytes(step_in_bytes, scratch_bytes)

    out = pl.pallas_call(
        kernel,
        out_shape=jax.ShapeDtypeStruct((num_cores, 1, 1), jnp.float32),
        grid_spec=pltpu.PrefetchScalarGridSpec(
            num_scalar_prefetch=0,
            grid=grid,
            in_specs=[
                pl.BlockSpec((dd, te), edge_map),      # F_{u->v} flattened
                pl.BlockSpec((dd, te), edge_map),      # F_{v->u} flattened
                # If profiling still shows exposed DMA at large te, add
                # pipeline_mode=pl.Buffered(3) to the two x specs below.
                pl.BlockSpec((d * F, te), edge_map),   # x[source]
                pl.BlockSpec((d * F, te), edge_map),   # x[target]
            ],
            out_specs=pl.BlockSpec((1, 1, 1), out_map),
            scratch_shapes=[pltpu.VMEM((F, tc), jnp.float32)],
        ),
        compiler_params=pltpu.CompilerParams(
            dimension_semantics=dims,
            vmem_limit_bytes=vmem_limit,
        ),
    )(maps_fwd, maps_rev, x_src, x_tgt)

    # Sum the per-core partials.
    return jnp.sum(out)


def dirichlet_energy_ref(restriction_maps, edge_index, rev_idx, x):
    """Pure-JAX f32 reference (mirrors the PyTorch edge loop, vectorized)."""
    f_fwd = restriction_maps
    f_rev = restriction_maps[rev_idx]
    xs = x[edge_index[0]]
    xt = x[edge_index[1]]
    term1 = jnp.sum(f_rev[:, :, :, None] * xt[:, None, :, :], axis=2)
    term2 = jnp.sum(f_fwd[:, :, :, None] * xs[:, None, :, :], axis=2)
    return jnp.sum((term1 - term2) ** 2)


def build_undirected_ring(num_nodes):
    """Directed edge list containing both orientations of a ring plus the
    reverse-edge index map (the (target, source) lookup in the PyTorch code)."""
    edges = []
    for i in range(num_nodes):
        j = (i + 1) % num_nodes
        edges.append((i, j))
        edges.append((j, i))
    edge_index = np.array(edges, dtype=np.int32).T          # (2, E)
    lookup = {(int(s), int(t)): e for e, (s, t) in enumerate(edges)}
    rev_idx = np.array([lookup[(int(t), int(s))] for (s, t) in edges],
                       dtype=np.int32)
    return edge_index, rev_idx


if __name__ == "__main__":
    num_nodes = 200
    d = 2                      # config.d (stalk dimension)
    num_features = 32

    edge_index_np, rev_idx_np = build_undirected_ring(num_nodes)
    num_edges = edge_index_np.shape[1]                       # 400 directed edges

    key = jax.random.PRNGKey(0)
    k_maps, k_x = jax.random.split(key)
    # _init_maps(init='random') -> uniform[0, 1)
    restriction_maps = jax.random.uniform(
        k_maps, (num_edges, d, d), dtype=jnp.float32)
    x = jax.random.normal(k_x, (num_nodes, d, num_features), dtype=jnp.float32)

    edge_index = jnp.asarray(edge_index_np)
    rev_idx = jnp.asarray(rev_idx_np)

    ref_f32 = dirichlet_energy_ref(restriction_maps, edge_index, rev_idx, x)

    # Run 1: small tiles so this tiny demo graph still exercises a multi-step
    # accumulating grid, the in-kernel lane-chunk loop and the zero-map tail
    # padding (production default is te=4096).
    energy_small = jax.jit(functools.partial(
        dirichlet_energy_pallas, te=256, tc=128))
    loss_bf16 = jax.block_until_ready(
        energy_small(restriction_maps, edge_index, rev_idx, x))

    # Exact check against a reference fed the same bf16-quantized x operands.
    x_q = x.astype(jnp.bfloat16).astype(jnp.float32)
    ref_q = dirichlet_energy_ref(restriction_maps, edge_index, rev_idx, x_q)
    np.testing.assert_allclose(np.asarray(loss_bf16), np.asarray(ref_q),
                               rtol=1e-4, atol=1e-2)
    # Sanity check against full-f32 module semantics (bf16 x cast only
    # perturbs the energy by ~0.1%).
    np.testing.assert_allclose(np.asarray(loss_bf16), np.asarray(ref_f32),
                               rtol=3e-2, atol=1e-1)

    # Run 2: production defaults (te=4096, auto tc / num_cores) with the exact
    # f32 x stream -- matches the PyTorch module numerics up to summation
    # order.
    energy_f32 = jax.jit(functools.partial(
        dirichlet_energy_pallas, x_dtype=jnp.float32))
    loss_f32 = jax.block_until_ready(
        energy_f32(restriction_maps, edge_index, rev_idx, x))
    np.testing.assert_allclose(np.asarray(loss_f32), np.asarray(ref_f32),
                               rtol=1e-4, atol=1e-2)

    print("KERNEL_OK")
</pallas_src>

<mosaic_0001>
module attributes {stable_mosaic.version = 11 : i64} {
  func.func @kernel(%arg0: i32, %arg1: memref<4x256xf32, #tpu.memory_space<vmem>>, %arg2: memref<4x256xf32, #tpu.memory_space<vmem>>, %arg3: memref<64x256xbf16, #tpu.memory_space<vmem>>, %arg4: memref<64x256xbf16, #tpu.memory_space<vmem>>, %arg5: memref<1x1x1xf32, #tpu.memory_space<vmem>>, %arg6: memref<32x128xf32, #tpu.memory_space<vmem>>) attributes {dimension_semantics = [#tpu.dimension_semantics<arbitrary>], iteration_bounds = array<i64: 2>, scalar_prefetch = 0 : i64, scratch_operands = 1 : i64, tpu.core_type = #tpu.core_type<tc>, window_params = [{transform_indices = @transform_0, window_bounds = array<i64: 4, 256>}, {transform_indices = @transform_1, window_bounds = array<i64: 4, 256>}, {transform_indices = @transform_2, window_bounds = array<i64: 64, 256>}, {transform_indices = @transform_3, window_bounds = array<i64: 64, 256>}, {pipeline_mode = #tpu.pipeline_mode<synchronous>, transform_indices = @transform_4, window_bounds = array<i64: 1, 1, 1>}]} {
    %c0_i32 = arith.constant 0 : i32
    %0 = arith.cmpi eq, %arg0, %c0_i32 : i32
    %1 = arith.extui %0 : i1 to i32
    %c0_i32_0 = arith.constant 0 : i32
    %2 = arith.cmpi ne, %1, %c0_i32_0 : i32
    scf.if %2 {
      %cst_45 = arith.constant 0.000000e+00 : f32
      %158 = vector.broadcast %cst_45 : f32 to vector<32x128xf32>
      %c0_46 = arith.constant 0 : index
      %c0_47 = arith.constant 0 : index
      %159 = vector.load %arg6[%c0_46, %c0_47] : memref<32x128xf32, #tpu.memory_space<vmem>>, vector<32x128xf32>
      tpu.vector_store %arg6[%c0_46, %c0_47], %158 {strides = array<i32>} : memref<32x128xf32, #tpu.memory_space<vmem>>, vector<32x128xf32>,
    } else {
    }
    %c0_i32_1 = arith.constant 0 : i32
    %c128_i32 = arith.constant 128 : i32
    %3 = arith.muli %c0_i32_1, %c128_i32 : i32
    %4 = tpu.assume_multiple %3, 128 : i32
    %cst = arith.constant 0.000000e+00 : f32
    %5 = vector.broadcast %cst : f32 to vector<32x128xf32>
    %cst_2 = arith.constant 0.000000e+00 : f32
    %6 = vector.broadcast %cst_2 : f32 to vector<32x128xf32>
    %c0 = arith.constant 0 : index
    %7 = arith.index_cast %4 : i32 to index
    %8 = vector.load %arg2[%c0, %7] : memref<4x256xf32, #tpu.memory_space<vmem>>, vector<1x128xf32>
    %c0_3 = arith.constant 0 : index
    %9 = arith.index_cast %4 : i32 to index
    %10 = vector.load %arg1[%c0_3, %9] : memref<4x256xf32, #tpu.memory_space<vmem>>, vector<1x128xf32>
    %c0_4 = arith.constant 0 : index
    %11 = arith.index_cast %4 : i32 to index
    %12 = vector.load %arg4[%c0_4, %11] : memref<64x256xbf16, #tpu.memory_space<vmem>>, vector<32x128xbf16>
    %13 = arith.extf %12 : vector<32x128xbf16> to vector<32x128xf32>
    %c0_5 = arith.constant 0 : index
    %14 = arith.index_cast %4 : i32 to index
    %15 = vector.load %arg3[%c0_5, %14] : memref<64x256xbf16, #tpu.memory_space<vmem>>, vector<32x128xbf16>
    %16 = arith.extf %15 : vector<32x128xbf16> to vector<32x128xf32>
    %17 = vector.broadcast %8 : vector<1x128xf32> to vector<32x128xf32>
    %18 = arith.mulf %17, %13 : vector<32x128xf32>
    %19 = vector.broadcast %10 : vector<1x128xf32> to vector<32x128xf32>
    %20 = arith.mulf %19, %16 : vector<32x128xf32>
    %21 = arith.subf %18, %20 : vector<32x128xf32>
    %22 = arith.addf %6, %21 : vector<32x128xf32>
    %c1 = arith.constant 1 : index
    %23 = arith.index_cast %4 : i32 to index
    %24 = vector.load %arg2[%c1, %23] : memref<4x256xf32, #tpu.memory_space<vmem>>, vector<1x128xf32>
    %c1_6 = arith.constant 1 : index
    %25 = arith.index_cast %4 : i32 to index
    %26 = vector.load %arg1[%c1_6, %25] : memref<4x256xf32, #tpu.memory_space<vmem>>, vector<1x128xf32>
    %c32 = arith.constant 32 : index
    %27 = arith.index_cast %4 : i32 to index
    %28 = vector.load %arg4[%c32, %27] : memref<64x256xbf16, #tpu.memory_space<vmem>>, vector<32x128xbf16>
    %29 = arith.extf %28 : vector<32x128xbf16> to vector<32x128xf32>
    %c32_7 = arith.constant 32 : index
    %30 = arith.index_cast %4 : i32 to index
    %31 = vector.load %arg3[%c32_7, %30] : memref<64x256xbf16, #tpu.memory_space<vmem>>, vector<32x128xbf16>
    %32 = arith.extf %31 : vector<32x128xbf16> to vector<32x128xf32>
    %33 = vector.broadcast %24 : vector<1x128xf32> to vector<32x128xf32>
    %34 = arith.mulf %33, %29 : vector<32x128xf32>
    %35 = vector.broadcast %26 : vector<1x128xf32> to vector<32x128xf32>
    %36 = arith.mulf %35, %32 : vector<32x128xf32>
    %37 = arith.subf %34, %36 : vector<32x128xf32>
    %38 = arith.addf %22, %37 : vector<32x128xf32>
    %39 = arith.mulf %38, %38 : vector<32x128xf32>
    %40 = arith.addf %5, %39 : vector<32x128xf32>
    %cst_8 = arith.constant 0.000000e+00 : f32
    %41 = vector.broadcast %cst_8 : f32 to vector<32x128xf32>
    %c2 = arith.constant 2 : index
    %42 = arith.index_cast %4 : i32 to index
    %43 = vector.load %arg2[%c2, %42] : memref<4x256xf32, #tpu.memory_space<vmem>>, vector<1x128xf32>
    %c2_9 = arith.constant 2 : index
    %44 = arith.index_cast %4 : i32 to index
    %45 = vector.load %arg1[%c2_9, %44] : memref<4x256xf32, #tpu.memory_space<vmem>>, vector<1x128xf32>
    %c0_10 = arith.constant 0 : index
    %46 = arith.index_cast %4 : i32 to index
    %47 = vector.load %arg4[%c0_10, %46] : memref<64x256xbf16, #tpu.memory_space<vmem>>, vector<32x128xbf16>
    %48 = arith.extf %47 : vector<32x128xbf16> to vector<32x128xf32>
    %c0_11 = arith.constant 0 : index
    %49 = arith.index_cast %4 : i32 to index
    %50 = vector.load %arg3[%c0_11, %49] : memref<64x256xbf16, #tpu.memory_space<vmem>>, vector<32x128xbf16>
    %51 = arith.extf %50 : vector<32x128xbf16> to vector<32x128xf32>
    %52 = vector.broadcast %43 : vector<1x128xf32> to vector<32x128xf32>
    %53 = arith.mulf %52, %48 : vector<32x128xf32>
    %54 = vector.broadcast %45 : vector<1x128xf32> to vector<32x128xf32>
    %55 = arith.mulf %54, %51 : vector<32x128xf32>
    %56 = arith.subf %53, %55 : vector<32x128xf32>
    %57 = arith.addf %41, %56 : vector<32x128xf32>
    %c3 = arith.constant 3 : index
    %58 = arith.index_cast %4 : i32 to index
    %59 = vector.load %arg2[%c3, %58] : memref<4x256xf32, #tpu.memory_space<vmem>>, vector<1x128xf32>
    %c3_12 = arith.constant 3 : index
    %60 = arith.index_cast %4 : i32 to index
    %61 = vector.load %arg1[%c3_12, %60] : memref<4x256xf32, #tpu.memory_space<vmem>>, vector<1x128xf32>
    %c32_13 = arith.constant 32 : index
    %62 = arith.index_cast %4 : i32 to index
    %63 = vector.load %arg4[%c32_13, %62] : memref<64x256xbf16, #tpu.memory_space<vmem>>, vector<32x128xbf16>
    %64 = arith.extf %63 : vector<32x128xbf16> to vector<32x128xf32>
    %c32_14 = arith.constant 32 : index
    %65 = arith.index_cast %4 : i32 to index
    %66 = vector.load %arg3[%c32_14, %65] : memref<64x256xbf16, #tpu.memory_space<vmem>>, vector<32x128xbf16>
    %67 = arith.extf %66 : vector<32x128xbf16> to vector<32x128xf32>
    %68 = vector.broadcast %59 : vector<1x128xf32> to vector<32x128xf32>
    %69 = arith.mulf %68, %64 : vector<32x128xf32>
    %70 = vector.broadcast %61 : vector<1x128xf32> to vector<32x128xf32>
    %71 = arith.mulf %70, %67 : vector<32x128xf32>
    %72 = arith.subf %69, %71 : vector<32x128xf32>
    %73 = arith.addf %57, %72 : vector<32x128xf32>
    %74 = arith.mulf %73, %73 : vector<32x128xf32>
    %75 = arith.addf %40, %74 : vector<32x128xf32>
    %c0_15 = arith.constant 0 : index
    %c0_16 = arith.constant 0 : index
    %76 = vector.load %arg6[%c0_15, %c0_16] : memref<32x128xf32, #tpu.memory_space<vmem>>, vector<32x128xf32>
    %77 = arith.addf %76, %75 : vector<32x128xf32>
    %c0_17 = arith.constant 0 : index
    %c0_18 = arith.constant 0 : index
    %78 = vector.load %arg6[%c0_17, %c0_18] : memref<32x128xf32, #tpu.memory_space<vmem>>, vector<32x128xf32>
    tpu.vector_store %arg6[%c0_17, %c0_18], %77 {strides = array<i32>} : memref<32x128xf32, #tpu.memory_space<vmem>>, vector<32x128xf32>,
    %c1_i32 = arith.constant 1 : i32
    %c128_i32_19 = arith.constant 128 : i32
    %79 = arith.muli %c1_i32, %c128_i32_19 : i32
    %80 = tpu.assume_multiple %79, 128 : i32
    %cst_20 = arith.constant 0.000000e+00 : f32
    %81 = vector.broadcast %cst_20 : f32 to vector<32x128xf32>
    %cst_21 = arith.constant 0.000000e+00 : f32
    %82 = vector.broadcast %cst_21 : f32 to vector<32x128xf32>
    %c0_22 = arith.constant 0 : index
    %83 = arith.index_cast %80 : i32 to index
    %84 = vector.load %arg2[%c0_22, %83] : memref<4x256xf32, #tpu.memory_space<vmem>>, vector<1x128xf32>
    %c0_23 = arith.constant 0 : index
    %85 = arith.index_cast %80 : i32 to index
    %86 = vector.load %arg1[%c0_23, %85] : memref<4x256xf32, #tpu.memory_space<vmem>>, vector<1x128xf32>
    %c0_24 = arith.constant 0 : index
    %87 = arith.index_cast %80 : i32 to index
    %88 = vector.load %arg4[%c0_24, %87] : memref<64x256xbf16, #tpu.memory_space<vmem>>, vector<32x128xbf16>
    %89 = arith.extf %88 : vector<32x128xbf16> to vector<32x128xf32>
    %c0_25 = arith.constant 0 : index
    %90 = arith.index_cast %80 : i32 to index
    %91 = vector.load %arg3[%c0_25, %90] : memref<64x256xbf16, #tpu.memory_space<vmem>>, vector<32x128xbf16>
    %92 = arith.extf %91 : vector<32x128xbf16> to vector<32x128xf32>
    %93 = vector.broadcast %84 : vector<1x128xf32> to vector<32x128xf32>
    %94 = arith.mulf %93, %89 : vector<32x128xf32>
    %95 = vector.broadcast %86 : vector<1x128xf32> to vector<32x128xf32>
    %96 = arith.mulf %95, %92 : vector<32x128xf32>
    %97 = arith.subf %94, %96 : vector<32x128xf32>
    %98 = arith.addf %82, %97 : vector<32x128xf32>
    %c1_26 = arith.constant 1 : index
    %99 = arith.index_cast %80 : i32 to index
    %100 = vector.load %arg2[%c1_26, %99] : memref<4x256xf32, #tpu.memory_space<vmem>>, vector<1x128xf32>
    %c1_27 = arith.constant 1 : index
    %101 = arith.index_cast %80 : i32 to index
    %102 = vector.load %arg1[%c1_27, %101] : memref<4x256xf32, #tpu.memory_space<vmem>>, vector<1x128xf32>
    %c32_28 = arith.constant 32 : index
    %103 = arith.index_cast %80 : i32 to index
    %104 = vector.load %arg4[%c32_28, %103] : memref<64x256xbf16, #tpu.memory_space<vmem>>, vector<32x128xbf16>
    %105 = arith.extf %104 : vector<32x128xbf16> to vector<32x128xf32>
    %c32_29 = arith.constant 32 : index
    %106 = arith.index_cast %80 : i32 to index
    %107 = vector.load %arg3[%c32_29, %106] : memref<64x256xbf16, #tpu.memory_space<vmem>>, vector<32x128xbf16>
    %108 = arith.extf %107 : vector<32x128xbf16> to vector<32x128xf32>
    %109 = vector.broadcast %100 : vector<1x128xf32> to vector<32x128xf32>
    %110 = arith.mulf %109, %105 : vector<32x128xf32>
    %111 = vector.broadcast %102 : vector<1x128xf32> to vector<32x128xf32>
    %112 = arith.mulf %111, %108 : vector<32x128xf32>
    %113 = arith.subf %110, %112 : vector<32x128xf32>
    %114 = arith.addf %98, %113 : vector<32x128xf32>
    %115 = arith.mulf %114, %114 : vector<32x128xf32>
    %116 = arith.addf %81, %115 : vector<32x128xf32>
    %cst_30 = arith.constant 0.000000e+00 : f32
    %117 = vector.broadcast %cst_30 : f32 to vector<32x128xf32>
    %c2_31 = arith.constant 2 : index
    %118 = arith.index_cast %80 : i32 to index
    %119 = vector.load %arg2[%c2_31, %118] : memref<4x256xf32, #tpu.memory_space<vmem>>, vector<1x128xf32>
    %c2_32 = arith.constant 2 : index
    %120 = arith.index_cast %80 : i32 to index
    %121 = vector.load %arg1[%c2_32, %120] : memref<4x256xf32, #tpu.memory_space<vmem>>, vector<1x128xf32>
    %c0_33 = arith.constant 0 : index
    %122 = arith.index_cast %80 : i32 to index
    %123 = vector.load %arg4[%c0_33, %122] : memref<64x256xbf16, #tpu.memory_space<vmem>>, vector<32x128xbf16>
    %124 = arith.extf %123 : vector<32x128xbf16> to vector<32x128xf32>
    %c0_34 = arith.constant 0 : index
    %125 = arith.index_cast %80 : i32 to index
    %126 = vector.load %arg3[%c0_34, %125] : memref<64x256xbf16, #tpu.memory_space<vmem>>, vector<32x128xbf16>
    %127 = arith.extf %126 : vector<32x128xbf16> to vector<32x128xf32>
    %128 = vector.broadcast %119 : vector<1x128xf32> to vector<32x128xf32>
    %129 = arith.mulf %128, %124 : vector<32x128xf32>
    %130 = vector.broadcast %121 : vector<1x128xf32> to vector<32x128xf32>
    %131 = arith.mulf %130, %127 : vector<32x128xf32>
    %132 = arith.subf %129, %131 : vector<32x128xf32>
    %133 = arith.addf %117, %132 : vector<32x128xf32>
    %c3_35 = arith.constant 3 : index
    %134 = arith.index_cast %80 : i32 to index
    %135 = vector.load %arg2[%c3_35, %134] : memref<4x256xf32, #tpu.memory_space<vmem>>, vector<1x128xf32>
    %c3_36 = arith.constant 3 : index
    %136 = arith.index_cast %80 : i32 to index
    %137 = vector.load %arg1[%c3_36, %136] : memref<4x256xf32, #tpu.memory_space<vmem>>, vector<1x128xf32>
    %c32_37 = arith.constant 32 : index
    %138 = arith.index_cast %80 : i32 to index
    %139 = vector.load %arg4[%c32_37, %138] : memref<64x256xbf16, #tpu.memory_space<vmem>>, vector<32x128xbf16>
    %140 = arith.extf %139 : vector<32x128xbf16> to vector<32x128xf32>
    %c32_38 = arith.constant 32 : index
    %141 = arith.index_cast %80 : i32 to index
    %142 = vector.load %arg3[%c32_38, %141] : memref<64x256xbf16, #tpu.memory_space<vmem>>, vector<32x128xbf16>
    %143 = arith.extf %142 : vector<32x128xbf16> to vector<32x128xf32>
    %144 = vector.broadcast %135 : vector<1x128xf32> to vector<32x128xf32>
    %145 = arith.mulf %144, %140 : vector<32x128xf32>
    %146 = vector.broadcast %137 : vector<1x128xf32> to vector<32x128xf32>
    %147 = arith.mulf %146, %143 : vector<32x128xf32>
    %148 = arith.subf %145, %147 : vector<32x128xf32>
    %149 = arith.addf %133, %148 : vector<32x128xf32>
    %150 = arith.mulf %149, %149 : vector<32x128xf32>
    %151 = arith.addf %116, %150 : vector<32x128xf32>
    %c0_39 = arith.constant 0 : index
    %c0_40 = arith.constant 0 : index
    %152 = vector.load %arg6[%c0_39, %c0_40] : memref<32x128xf32, #tpu.memory_space<vmem>>, vector<32x128xf32>
    %153 = arith.addf %152, %151 : vector<32x128xf32>
    %c0_41 = arith.constant 0 : index
    %c0_42 = arith.constant 0 : index
    %154 = vector.load %arg6[%c0_41, %c0_42] : memref<32x128xf32, #tpu.memory_space<vmem>>, vector<32x128xf32>
    tpu.vector_store %arg6[%c0_41, %c0_42], %153 {strides = array<i32>} : memref<32x128xf32, #tpu.memory_space<vmem>>, vector<32x128xf32>,
    %c2_i32 = arith.constant 2 : i32
    %c1_i32_43 = arith.constant 1 : i32
    %155 = arith.cmpi eq, %arg0, %c1_i32_43 : i32
    %156 = arith.extui %155 : i1 to i32
    %c0_i32_44 = arith.constant 0 : i32
    %157 = arith.cmpi ne, %156, %c0_i32_44 : i32
    scf.if %157 {
      %c0_45 = arith.constant 0 : index
      %c0_46 = arith.constant 0 : index
      %158 = vector.load %arg6[%c0_45, %c0_46] : memref<32x128xf32, #tpu.memory_space<vmem>>, vector<32x128xf32>
      %159 = vector.shape_cast %158 : vector<32x128xf32> to vector<1x32x128xf32>
      %cst_47 = arith.constant dense<0.000000e+00> : vector<1xf32>
      %160 = vector.multi_reduction <add>, %159, %cst_47 [1, 2] : vector<1x32x128xf32> to vector<1xf32>
      %161 = vector.shape_cast %160 : vector<1xf32> to vector<1x1x1xf32>
      %162 = vector.extract %161[0, 0, 0] : f32 from vector<1x1x1xf32>
      %163 = vector.broadcast %162 : f32 to vector<1x1x1xf32>
      %c0_48 = arith.constant 0 : index
      %c0_49 = arith.constant 0 : index
      %c0_50 = arith.constant 0 : index
      %164 = vector.load %arg5[%c0_48, %c0_49, %c0_50] : memref<1x1x1xf32, #tpu.memory_space<vmem>>, vector<1x1x1xf32>
      tpu.vector_store %arg5[%c0_48, %c0_49, %c0_50], %163 {strides = array<i32>} : memref<1x1x1xf32, #tpu.memory_space<vmem>>, vector<1x1x1xf32>,
    } else {
    }
    return
  }
  func.func @transform_0(%arg0: i32) -> (i32, i32) {
    %c0_i32 = arith.constant 0 : i32
    %c0_i32_0 = arith.constant 0 : i32
    return %c0_i32, %arg0 : i32, i32
  }
  func.func @transform_1(%arg0: i32) -> (i32, i32) {
    %c0_i32 = arith.constant 0 : i32
    %c0_i32_0 = arith.constant 0 : i32
    return %c0_i32, %arg0 : i32, i32
  }
  func.func @transform_2(%arg0: i32) -> (i32, i32) {
    %c0_i32 = arith.constant 0 : i32
    %c0_i32_0 = arith.constant 0 : i32
    return %c0_i32, %arg0 : i32, i32
  }
  func.func @transform_3(%arg0: i32) -> (i32, i32) {
    %c0_i32 = arith.constant 0 : i32
    %c0_i32_0 = arith.constant 0 : i32
    return %c0_i32, %arg0 : i32, i32
  }
  func.func @transform_4(%arg0: i32) -> (i32, i32, i32) {
    %c0_i32 = arith.constant 0 : i32
    %c0_i32_0 = arith.constant 0 : i32
    %c0_i32_1 = arith.constant 0 : i32
    %c0_i32_2 = arith.constant 0 : i32
    return %c0_i32, %c0_i32_0, %c0_i32_1 : i32, i32, i32
  }
}

</mosaic_0001>

<bundles_post_ra>
// kernel: dirichlet_energy_pallas.1
= control target key start
LH: loop header
LB: loop body
LE: loop exit
PB: predicated region body
PF: predicated region fallthrough
CT: control target
= control target key end

     0   :  { %9 = vsyncpa [#allocation6], 0  ;;  %s1012_s15 = smov 0   ;;  %s1014_s16 = smov 0   ;;  %s1321_s0 = inlined_call_operand.vmem [shape: f32[4,512], index: 0, kind: input, shape index: {}]   ;;  %s1322_s1 = inlined_call_operand.vmem [shape: f32[4,512], index: 1, kind: input, shape index: {}]   ;;  %s1323_s2 = inlined_call_operand.vmem [shape: bf16[64,512], index: 2, kind: input, shape index: {}]   ;;  %s1324_s3 = inlined_call_operand.vmem [shape: bf16[64,512], index: 3, kind: input, shape index: {}]   ;;  %s1325_s4 = inlined_call_operand.hbm [shape: f32[1,1,1], index: 4, kind: output, shape index: {}]  }
   0x1   :  { %s1016_s17 = smov 0  }
   0x2 LB: > { %s1028_s18 = sadd.s32 4294967295, %s983_s17   ;;  %s1031_s19 = sadd.s32 1, %s983_s17   ;;  %s983_s17 = sphi %s1016_s17, %s1329_s17   ;;  %s979_s16 = sphi %s1014_s16, %s1328_s16   ;;  %s975_s15 = sphi %s1012_s15, %s1327_s15  }
   0x3   : > { %s71_s20 = ssub.s32 %s983_s17, %s1031_s19  ;;  %s74_s21 = sadd.s32 1, %s979_s16 }
   0x4   : > { %p72_p0 = scmp.eq.s32.totalorder %s71_s20, 0  ;;  %p81_p1 = scmp.ne.s32.totalorder %s979_s16, %s975_s15 }
   0x5   : > { %p82_p2 = scmp.eq.s32.totalorder %s983_s17, 0  ;;  %p835_p4 = scmp.ge.s32.totalorder %s983_s17, 2 }
   0x6   : > { %s1040_s22 = scalar_select %p72_p0, %s979_s16, %s74_s21  }
   0x7   : > { %p1042_p3 = por %p82_p2, %p81_p1  ;;  %154 = sbr.rel (%p835_p4) target bundleno = 30 (0x1e), region = 16 }
   0xe   : > { %175 = sbr.rel (!%p1042_p3) target bundleno = 22 (0x16), region = 28  ;;  %s177_s24 = sand.u32 (%p1042_p3), 1, %s979_s16  }
   0xf   : > { %s895_s25 = sshll.u32 (%p1042_p3), %s983_s17, 3  ;;  %s836_s26 = sshll.u32 (%p1042_p3), %s177_s24, 6 }
  0x10   : > { %s182_s29 = scalar_lea.vmem (%p1042_p3), %s1323_s2, %s895_s25  ;;  %s179_s30 = scalar_lea.vmem (%p1042_p3), [#allocation3], %s836_s26 }
  0x11   : > { %v224_v0 = vld [vmem:[%s182_s29] sm:$0xff] (%p1042_p3)  ;;  %v226_v1 = vld [vmem:[%s182_s29 + $0x10] sm:$0xff] (%p1042_p3) }
  0x12   : > { %v228_v2 = vld [vmem:[%s182_s29 + $0x20] sm:$0xff] (%p1042_p3)  ;;  %225 = vst [vmem:[%s179_s30] sm:$0xff] (%p1042_p3), %v224_v0  ;;  %227 = vst [vmem:[%s179_s30 + $0x8] sm:$0xff] (%p1042_p3), %v226_v1  ;;  %v230_v3 = vld [vmem:[%s182_s29 + $0x30] sm:$0xff] (%p1042_p3) }
  0x13   : > { %229 = vst [vmem:[%s179_s30 + $0x10] sm:$0xff] (%p1042_p3), %v228_v2  ;;  %v232_v4 = vld [vmem:[%s182_s29 + $0x40] sm:$0xff] (%p1042_p3)  ;;  %v234_v5 = vld [vmem:[%s182_s29 + $0x50] sm:$0xff] (%p1042_p3)  ;;  %231 = vst [vmem:[%s179_s30 + $0x18] sm:$0xff] (%p1042_p3), %v230_v3 }
  0x14   : > { %233 = vst [vmem:[%s179_s30 + $0x20] sm:$0xff] (%p1042_p3), %v232_v4  ;;  %235 = vst [vmem:[%s179_s30 + $0x28] sm:$0xff] (%p1042_p3), %v234_v5  ;;  %v236_v6 = vld [vmem:[%s182_s29 + $0x60] sm:$0xff] (%p1042_p3)  ;;  %v238_v7 = vld [vmem:[%s182_s29 + $0x70] sm:$0xff] (%p1042_p3) }
  0x15   : > { %237 = vst [vmem:[%s179_s30 + $0x30] sm:$0xff] %v236_v6  ;;  %239 = vst [vmem:[%s179_s30 + $0x38] sm:$0xff] %v238_v7 }
  0x16 PF: > { %245 = sbr.rel (!%p1042_p3) target bundleno = 30 (0x1e), region = 66  ;;  %s247_s5 = sand.u32 (%p1042_p3), 1, %s979_s16  }
  0x17   : > { %s896_s6 = sshll.u32 (%p1042_p3), %s983_s17, 3  ;;  %s839_s7 = sshll.u32 (%p1042_p3), %s247_s5, 6 }
  0x18   : > { %s252_s10 = scalar_lea.vmem (%p1042_p3), %s1324_s3, %s896_s6  ;;  %s249_s11 = scalar_lea.vmem (%p1042_p3), [#allocation4], %s839_s7 }
  0x19   : > { %v294_v8 = vld [vmem:[%s252_s10] sm:$0xff] (%p1042_p3)  ;;  %v296_v9 = vld [vmem:[%s252_s10 + $0x10] sm:$0xff] (%p1042_p3) }
  0x1a   : > { %v298_v10 = vld [vmem:[%s252_s10 + $0x20] sm:$0xff] (%p1042_p3)  ;;  %295 = vst [vmem:[%s249_s11] sm:$0xff] (%p1042_p3), %v294_v8  ;;  %297 = vst [vmem:[%s249_s11 + $0x8] sm:$0xff] (%p1042_p3), %v296_v9  ;;  %v300_v11 = vld [vmem:[%s252_s10 + $0x30] sm:$0xff] (%p1042_p3) }
  0x1b   : > { %299 = vst [vmem:[%s249_s11 + $0x10] sm:$0xff] (%p1042_p3), %v298_v10  ;;  %v302_v12 = vld [vmem:[%s252_s10 + $0x40] sm:$0xff] (%p1042_p3)  ;;  %v304_v13 = vld [vmem:[%s252_s10 + $0x50] sm:$0xff] (%p1042_p3)  ;;  %301 = vst [vmem:[%s249_s11 + $0x18] sm:$0xff] (%p1042_p3), %v300_v11 }
  0x1c   : > { %303 = vst [vmem:[%s249_s11 + $0x20] sm:$0xff] (%p1042_p3), %v302_v12  ;;  %305 = vst [vmem:[%s249_s11 + $0x28] sm:$0xff] (%p1042_p3), %v304_v13  ;;  %v306_v14 = vld [vmem:[%s252_s10 + $0x60] sm:$0xff] (%p1042_p3)  ;;  %v308_v15 = vld [vmem:[%s252_s10 + $0x70] sm:$0xff] (%p1042_p3) }
  0x1d   : > { %307 = vst [vmem:[%s249_s11 + $0x30] sm:$0xff] %v306_v14  ;;  %309 = vst [vmem:[%s249_s11 + $0x38] sm:$0xff] %v308_v15 }
  0x1e PF: > { %p842_p5 = scmp.ge.s32.totalorder %s983_s17, 1  ;;  %p314_p6 = scmp.lt.s32.totalorder %s983_s17, 3 }
  0x20   : > { %p315_p7 = pnand %p842_p5, %p314_p6 }
  0x21   : > { %s321_s12 = sand.u32 (!%p315_p7), 1, %s975_s15   ;;  %s845_s13 = sshll.u32 (!%p315_p7), %s1028_s18, 1 }
  0x22   : > { %318 = sbr.rel (%p315_p7) target bundleno = 344 (0x158), region = 104  ;;  %s843_s14 = sshll.u32 (!%p315_p7), %s321_s12, 6 }
  0x23   : > { %p363_p8 = scmp.lt.s32.totalorder (!%p315_p7), %s845_s13, 3  ;;  %s1075_s17 = scalar_lea.vmem (!%p315_p7), [#allocation3], %s843_s14 }
  0x24   : > { %s1077_s28 = scalar_lea.vmem (!%p315_p7), [#allocation4], %s843_s14  ;;  %p849_p9 = scmp.ne.s32.totalorder (!%p315_p7), %s1028_s18, 0 }
  0x29   : > { %s1331_s13 = smov (!%p363_p8, %s845_s13), 3  ;;  %379 = sbr.rel (%p849_p9) target bundleno = 48 (0x30), region = 116 }
  0x2a   : > { %s846_s20 = sshll.u32 %s1331_s13, 2  ;;  %v985_v16 = vmov (!%p849_p9), 0.0  }
  0x2b   : > { %s1068_s24 = scalar_lea.vmem %s1321_s0, %s846_s20  ;;  %s1073_s27 = scalar_lea.vmem %s1322_s1, %s846_s20  ;;  %380 = vst [vmem:[#allocation2] sm:$0xff] (!%p849_p9), %v985_v16  ;;  %381 = vst [vmem:[#allocation2 + $0x8] sm:$0xff] (!%p849_p9), %v985_v16 }
  0x2c   : > { %382 = vst [vmem:[#allocation2 + $0x10] sm:$0xff] (!%p849_p9), %v985_v16  ;;  %383 = vst [vmem:[#allocation2 + $0x18] sm:$0xff] (!%p849_p9), %v985_v16 }
  0x30 PF: > { %v1081_v17 = vld [vmem:[%s1073_s27] ss:$0 sm:$0xff]  ;;  %v1094_v22 = vld [vmem:[%s1073_s27 + $0x1] ss:$0 sm:$0xff]  ;;  %v1107_v27 = vld [vmem:[%s1073_s27 + $0x2] ss:$0 sm:$0xff] }
  0x31   : > { %v1084_v18 = vld [vmem:[%s1068_s24] ss:$0 sm:$0xff]  ;;  %v1097_v23 = vld [vmem:[%s1068_s24 + $0x1] ss:$0 sm:$0xff]  ;;  %v1113_v31 = vld [vmem:[%s1068_s24 + $0x2] ss:$0 sm:$0xff] }
  0x32   : > { %v1087_v19 = vld [vmem:[%s1077_s28] sm:$0xff]   ;;  %v1125_v37 = vld [vmem:[%s1077_s28 + $0x8] sm:$0xff]   ;;  %v1151_v59 = vld [vmem:[%s1077_s28 + $0x10] sm:$0xff]   ;;  %p890_p10 = scmp.ne.s32.totalorder %s1028_s18, 1 }
  0x33   : > { %v390_v20 = vunpack.c.l.bf16 %v1087_v19  ;;  %v1091_v21 = vld [vmem:[%s1075_s17] sm:$0xff]   ;;  %v1128_v38 = vld [vmem:[%s1075_s17 + $0x8] sm:$0xff]   ;;  %v557_v39 = vunpack.c.h.bf16 %v1087_v19  ;;  %v391_v49 = vunpack.c.l.bf16 %v1125_v37  ;;  %v1156_v0 = vld [vmem:[%s1075_s17 + $0x10] sm:$0xff]   ;;  %v392_v9 = vunpack.c.l.bf16 %v1151_v59 }
  0x34   : > { %v398_v24 = vunpack.c.l.bf16 %v1091_v21  ;;  %v1101_v25 = vld [vmem:[%s1077_s28 + $0x20] sm:$0xff]   ;;  %v566_v40 = vunpack.c.h.bf16 %v1091_v21  ;;  %v1137_v45 = vld [vmem:[%s1077_s28 + $0x28] sm:$0xff]   ;;  %v399_v50 = vunpack.c.l.bf16 %v1128_v38  ;;  %v1159_v1 = vld [vmem:[%s1077_s28 + $0x30] sm:$0xff]   ;;  %v400_v12 = vunpack.c.l.bf16 %v1156_v0 }
  0x35   : > { %v1104_v26 = vld [vmem:[%s1075_s17 + $0x20] sm:$0xff]   ;;  %v406_v28 = vmul.f32 %v1081_v17, %v390_v20  ;;  %v432_v29 = vunpack.c.l.bf16 %v1101_v25  ;;  %v482_v32 = vmul.f32 %v1107_v27, %v390_v20  ;;  %v1140_v46 = vld [vmem:[%s1075_s17 + $0x28] sm:$0xff]   ;;  %v433_v53 = vunpack.c.l.bf16 %v1137_v45  ;;  %v1162_v2 = vld [vmem:[%s1075_s17 + $0x30] sm:$0xff]  }
  0x36   : > { %v440_v30 = vunpack.c.l.bf16 %v1104_v26  ;;  %v1117_v33 = vld [vmem:[%s1073_s27 + $0x3] ss:$0 sm:$0xff]  ;;  %v414_v35 = vmul.f32 %v1084_v18, %v398_v24  ;;  %v490_v36 = vmul.f32 %v1113_v31, %v398_v24  ;;  %v441_v54 = vunpack.c.l.bf16 %v1140_v46 }
  0x37   : > { %v1120_v34 = vld [vmem:[%s1068_s24 + $0x3] ss:$0 sm:$0xff]  ;;  %v448_v41 = vmul.f32 %v1094_v22, %v432_v29  ;;  %v508_v43 = vmul.f32 %v1117_v33, %v432_v29  ;;  %v407_v55 = vmul.f32 %v1081_v17, %v391_v49  ;;  %v415_v56 = vmul.f32 %v1084_v18, %v399_v50 }
  0x38   : > { %v456_v42 = vmul.f32 %v1097_v23, %v440_v30  ;;  %v516_v44 = vmul.f32 %v1120_v34, %v440_v30  ;;  %v418_v47 = vsub.f32 %v406_v28, %v414_v35  ;;  %v494_v48 = vsub.f32 %v482_v32, %v490_v36  ;;  %v1177_v35 = vld [vmem:[%s1077_s28 + $0x18] sm:$0xff]  }
  0x39   : > { %v483_v57 = vmul.f32 %v1107_v27, %v391_v49  ;;  %v491_v58 = vmul.f32 %v1113_v31, %v399_v50  ;;  %v449_v62 = vmul.f32 %v1094_v22, %v433_v53  ;;  %v457_v63 = vmul.f32 %v1097_v23, %v441_v54  ;;  %v1180_v36 = vld [vmem:[%s1075_s17 + $0x18] sm:$0xff]  }
  0x3a   : > { %v460_v51 = vsub.f32 %v448_v41, %v456_v42  ;;  %v520_v52 = vsub.f32 %v508_v43, %v516_v44  ;;  %v419_v3 = vsub.f32 %v407_v55, %v415_v56  ;;  %v509_v5 = vmul.f32 %v1117_v33, %v433_v53  ;;  %v1183_v41 = vld [vmem:[%s1077_s28 + $0x38] sm:$0xff]  }
  0x3b   : > { %v495_v4 = vsub.f32 %v483_v57, %v491_v58  ;;  %v517_v6 = vmul.f32 %v1120_v34, %v441_v54  ;;  %v461_v8 = vsub.f32 %v449_v62, %v457_v63  ;;  %v600_v10 = vunpack.c.h.bf16 %v1101_v25 }
  0x3c   : > { %v464_v60 = vadd.f32 %v460_v51, %v418_v47  ;;  %v524_v61 = vadd.f32 %v520_v52, %v494_v48  ;;  %v434_v13 = vunpack.c.l.bf16 %v1159_v1  ;;  %v442_v14 = vunpack.c.l.bf16 %v1162_v2  ;;  %v1188_v47 = vld [vmem:[%s1075_s17 + $0x38] sm:$0xff]  }
  0x3d   : > { %v521_v11 = vsub.f32 %v509_v5, %v517_v6  ;;  %v465_v16 = vadd.f32 %v461_v8, %v419_v3  ;;  %v408_v20 = vmul.f32 %v1081_v17, %v392_v9  ;;  %v484_v24 = vmul.f32 %v1107_v27, %v392_v9  ;;  %v1204_v5 = vld [vmem:[%s1068_s24 + $0x4] ss:$0 sm:$0xff] }
  0x3e   : > { %v468_v7 = vmul.f32 %v464_v60, %v464_v60  ;;  %v528_v15 = vmul.f32 %v524_v61, %v524_v61  ;;  %v416_v29 = vmul.f32 %v1084_v18, %v400_v12  ;;  %v450_v30 = vmul.f32 %v1094_v22, %v434_v13 }
  0x3f   : > { %v525_v28 = vadd.f32 %v521_v11, %v495_v4  ;;  %v458_v32 = vmul.f32 %v1097_v23, %v442_v14  ;;  %v469_v42 = vmul.f32 %v465_v16, %v465_v16  ;;  %v492_v43 = vmul.f32 %v1113_v31, %v400_v12  ;;  %v1201_v4 = vld [vmem:[%s1073_s27 + $0x4] ss:$0 sm:$0xff]  ;;  %v1208_v11 = vld [vmem:[%s1073_s27 + $0x5] ss:$0 sm:$0xff] }
  0x40   : > { %v510_v44 = vmul.f32 %v1117_v33, %v434_v13  ;;  %v608_v48 = vunpack.c.h.bf16 %v1104_v26  ;;  %v420_v50 = vsub.f32 %v408_v20, %v416_v29  ;;  %v518_v52 = vmul.f32 %v1120_v34, %v442_v14  ;;  %v1217_v14 = vld [vmem:[%s1073_s27 + $0x6] ss:$0 sm:$0xff] }
  0x41   : > { %v529_v49 = vmul.f32 %v525_v28, %v525_v28  ;;  %v462_v51 = vsub.f32 %v450_v30, %v458_v32  ;;  %v496_v53 = vsub.f32 %v484_v24, %v492_v43  ;;  %v393_v54 = vunpack.c.l.bf16 %v1177_v35  ;;  %v1226_v24 = vld [vmem:[%s1068_s24 + $0x6] ss:$0 sm:$0xff]  ;;  %v1229_v28 = vld [vmem:[%s1073_s27 + $0x7] ss:$0 sm:$0xff] }
  0x42   : > { %v401_v55 = vunpack.c.l.bf16 %v1180_v36  ;;  %v435_v56 = vunpack.c.l.bf16 %v1183_v41  ;;  %v532_v57 = vadd.f32 %v528_v15, %v468_v7  ;;  %v522_v60 = vsub.f32 %v510_v44, %v518_v52  ;;  %v1236_v32 = vld [vmem:[%s1068_s24 + $0x7] ss:$0 sm:$0xff] }
  0x43   : > { %v466_v58 = vadd.f32 %v462_v51, %v420_v50  ;;  %v443_v26 = vunpack.c.l.bf16 %v1188_v47  ;;  %v409_v61 = vmul.f32 %v1081_v17, %v393_v54  ;;  %v485_v3 = vmul.f32 %v1107_v27, %v393_v54  ;;  %v1211_v17 = vld [vmem:[%s1068_s24 + $0x5] ss:$0 sm:$0xff] }
  0x44   : > { %v417_v62 = vmul.f32 %v1084_v18, %v401_v55  ;;  %v451_v63 = vmul.f32 %v1094_v22, %v435_v56  ;;  %v533_v6 = vadd.f32 %v529_v49, %v469_v42  ;;  %v526_v8 = vadd.f32 %v522_v60, %v496_v53  ;;  %v536_v18 = vld [vmem:[#allocation2] sm:$0xff] }
  0x45   : > { %v470_v7 = vmul.f32 %v466_v58, %v466_v58  ;;  %v459_v9 = vmul.f32 %v1097_v23, %v443_v26  ;;  %v493_v22 = vmul.f32 %v1113_v31, %v401_v55  ;;  %v511_v27 = vmul.f32 %v1117_v33, %v435_v56  ;;  %v537_v31 = vld [vmem:[#allocation2 + $0x8] sm:$0xff] }
  0x46   : > { %v421_v12 = vsub.f32 %v409_v61, %v417_v62  ;;  %v519_v13 = vmul.f32 %v1120_v34, %v443_v26  ;;  %v530_v15 = vmul.f32 %v526_v8, %v526_v8  ;;  %v574_v23 = vmul.f32 %v1201_v4, %v557_v39 }
  0x47   : > { %v463_v16 = vsub.f32 %v451_v63, %v459_v9  ;;  %v582_v20 = vmul.f32 %v1204_v5, %v566_v40  ;;  %v497_v33 = vsub.f32 %v485_v3, %v493_v22  ;;  %v616_v34 = vmul.f32 %v1208_v11, %v600_v10 }
  0x48   : > { %v523_v29 = vsub.f32 %v511_v27, %v519_v13  ;;  %v624_v30 = vmul.f32 %v1211_v17, %v608_v48  ;;  %v540_v42 = vadd.f32 %v536_v18, %v532_v57  ;;  %v650_v44 = vmul.f32 %v1217_v14, %v557_v39 }
  0x49   : > { %v586_v43 = vsub.f32 %v574_v23, %v582_v20  ;;  %v467_v49 = vadd.f32 %v463_v16, %v421_v12  ;;  %v658_v51 = vmul.f32 %v1226_v24, %v566_v40  ;;  %v676_v52 = vmul.f32 %v1229_v28, %v600_v10 }
  0x4a   : > { %v628_v50 = vsub.f32 %v616_v34, %v624_v30  ;;  %v541_v53 = vadd.f32 %v537_v31, %v533_v6  ;;  %v1247_v54 = vadd.f32 %v530_v15, %v470_v7  ;;  %v684_v55 = vmul.f32 %v1236_v32, %v608_v48 }
  0x4b   : > { %v558_v56 = vunpack.c.h.bf16 %v1125_v37  ;;  %v527_v19 = vadd.f32 %v523_v29, %v497_v33  ;;  %v662_v39 = vsub.f32 %v650_v44, %v658_v51  ;;  %v567_v58 = vunpack.c.h.bf16 %v1128_v38 }
  0x4c   : > { %v632_v57 = vadd.f32 %v628_v50, %v586_v43  ;;  %v688_v60 = vsub.f32 %v676_v52, %v684_v55  ;;  %v601_v40 = vunpack.c.h.bf16 %v1137_v45  ;;  %v609_v25 = vunpack.c.h.bf16 %v1140_v46 }
  0x4d   : > { %v575_v21 = vmul.f32 %v1201_v4, %v558_v56  ;;  %v471_v10 = vmul.f32 %v467_v49, %v467_v49  ;;  %v583_v61 = vmul.f32 %v1204_v5, %v567_v58  ;;  %v651_v48 = vmul.f32 %v1217_v14, %v558_v56 }
  0x4e   : > { %v636_v26 = vmul.f32 %v632_v57, %v632_v57  ;;  %v692_v62 = vadd.f32 %v688_v60, %v662_v39  ;;  %v617_v37 = vmul.f32 %v1208_v11, %v601_v40  ;;  %v625_v63 = vmul.f32 %v1211_v17, %v609_v25  ;;  %v538_v39 = vld [vmem:[#allocation2 + $0x10] sm:$0xff] }
  0x4f   : > { %v659_v38 = vmul.f32 %v1226_v24, %v567_v58  ;;  %v531_v3 = vmul.f32 %v527_v19, %v527_v19  ;;  %v587_v6 = vsub.f32 %v575_v21, %v583_v61  ;;  %v677_v7 = vmul.f32 %v1229_v28, %v601_v40 }
  0x50   : > { %v685_v45 = vmul.f32 %v1236_v32, %v609_v25  ;;  %v696_v46 = vmul.f32 %v692_v62, %v692_v62  ;;  %v629_v8 = vsub.f32 %v617_v37, %v625_v63  ;;  %v559_v18 = vunpack.c.h.bf16 %v1151_v59 }
  0x51   : > { %v663_v9 = vsub.f32 %v651_v48, %v659_v38  ;;  %v568_v22 = vunpack.c.h.bf16 %v1156_v0  ;;  %v602_v27 = vunpack.c.h.bf16 %v1159_v1  ;;  %v610_v13 = vunpack.c.h.bf16 %v1162_v2 }
  0x52   : > { %v689_v12 = vsub.f32 %v677_v7, %v685_v45  ;;  %v700_v15 = vadd.f32 %v696_v46, %v636_v26  ;;  %v633_v16 = vadd.f32 %v629_v8, %v587_v6  ;;  %v576_v23 = vmul.f32 %v1201_v4, %v559_v18 }
  0x53   : > { %v652_v20 = vmul.f32 %v1217_v14, %v559_v18  ;;  %v584_v33 = vmul.f32 %v1204_v5, %v568_v22  ;;  %v618_v29 = vmul.f32 %v1208_v11, %v602_v27  ;;  %v626_v59 = vmul.f32 %v1211_v17, %v610_v13 }
  0x54   : > { %v693_v31 = vadd.f32 %v689_v12, %v663_v9  ;;  %v708_v34 = vadd.f32 %v700_v15, %v540_v42  ;;  %v637_v30 = vmul.f32 %v633_v16, %v633_v16  ;;  %v660_v0 = vmul.f32 %v1226_v24, %v568_v22 }
  0x55   : > { %v678_v1 = vmul.f32 %v1229_v28, %v602_v27  ;;  %v588_v43 = vsub.f32 %v576_v23, %v584_v33  ;;  %v630_v44 = vsub.f32 %v618_v29, %v626_v59  ;;  %v686_v49 = vmul.f32 %v1236_v32, %v610_v13 }
  0x56   : > { %v697_v2 = vmul.f32 %v693_v31, %v693_v31  ;;  %712 = vst [vmem:[#allocation2] sm:$0xff] %v708_v34  ;;  %v664_v50 = vsub.f32 %v652_v20, %v660_v0  ;;  %v560_v51 = vunpack.c.h.bf16 %v1177_v35  ;;  %v569_v52 = vunpack.c.h.bf16 %v1180_v36 }
  0x57   : > { %v603_v55 = vunpack.c.h.bf16 %v1183_v41  ;;  %v634_v42 = vadd.f32 %v630_v44, %v588_v43  ;;  %v690_v19 = vsub.f32 %v678_v1, %v686_v49  ;;  %v611_v57 = vunpack.c.h.bf16 %v1188_v47 }
  0x58   : > { %v701_v56 = vadd.f32 %v697_v2, %v637_v30  ;;  %v577_v58 = vmul.f32 %v1201_v4, %v560_v51  ;;  %v585_v60 = vmul.f32 %v1204_v5, %v569_v52  ;;  %v653_v40 = vmul.f32 %v1217_v14, %v560_v51 }
  0x59   : > { %v619_v21 = vmul.f32 %v1208_v11, %v603_v55  ;;  %v638_v35 = vmul.f32 %v634_v42, %v634_v42  ;;  %v694_v26 = vadd.f32 %v690_v19, %v664_v50  ;;  %v627_v36 = vmul.f32 %v1211_v17, %v611_v57 }
  0x5a   : > { %v709_v25 = vadd.f32 %v701_v56, %v541_v53  ;;  %v589_v41 = vsub.f32 %v577_v58, %v585_v60  ;;  %v661_v61 = vmul.f32 %v1226_v24, %v569_v52  ;;  %v679_v48 = vmul.f32 %v1229_v28, %v603_v55  ;;  %v539_v53 = vld [vmem:[#allocation2 + $0x18] sm:$0xff] }
  0x5b   : > { %v687_v47 = vmul.f32 %v1236_v32, %v611_v57  ;;  %v542_v4 = vadd.f32 %v538_v39, %v1247_v54  ;;  %v698_v5 = vmul.f32 %v694_v26, %v694_v26  ;;  %v631_v62 = vsub.f32 %v619_v21, %v627_v36 }
  0x5c   : > { %713 = vst [vmem:[#allocation2 + $0x8] sm:$0xff] %v709_v25  ;;  %v535_v11 = vadd.f32 %v531_v3, %v471_v10  ;;  %v665_v37 = vsub.f32 %v653_v40, %v661_v61  ;;  %vm737_vm0 = vcmask (!%p890_p10), 0  }
  0x5d   : > { %v691_v14 = vsub.f32 %v679_v48, %v687_v47  ;;  %v702_v63 = vadd.f32 %v698_v5, %v638_v35  ;;  %v635_v38 = vadd.f32 %v631_v62, %v589_v41  ;;  %v720_v32 = vld [vmem:[#allocation2] sm:$0xff] (!%p890_p10) }
  0x5e   : > { %v543_v45 = vadd.f32 %v539_v53, %v535_v11 }
  0x5f   : > { %v695_v6 = vadd.f32 %v691_v14, %v665_v37  ;;  %v710_v17 = vadd.f32 %v702_v63, %v542_v4  ;;  %v639_v7 = vmul.f32 %v635_v38, %v635_v38 }
  0x61   : > { %v699_v24 = vmul.f32 %v695_v6, %v695_v6  ;;  %714 = vst [vmem:[#allocation2 + $0x10] sm:$0xff] %v710_v17  ;;  %719 = sbr.rel (%p890_p10) target bundleno = 319 (0x13f), region = 120 }
  0x63   : > { %v703_v28 = vadd.f32 %v699_v24, %v639_v7  ;;  %v721_v54 = vld [vmem:[#allocation2 + $0x8] sm:$0xff] (!%p890_p10) }
  0x64   : > { %v724_v3 = vadd.f32 (!%p890_p10), %v721_v54, %v720_v32 }
  0x65   : > { %v711_v46 = vadd.f32 %v703_v28, %v543_v45 }
  0x67   : > { %715 = vst [vmem:[#allocation2 + $0x18] sm:$0xff] %v711_v46 }
  0x68   : > { %v722_v10 = vld [vmem:[#allocation2 + $0x10] sm:$0xff] }
  0x69   : > { %v725_v9 = vadd.f32 %v724_v3, %v722_v10 }
  0x6e   : > { %v723_v8 = vld [vmem:[#allocation2 + $0x18] sm:$0xff] }
  0x6f   : > { %v726_v18 = vadd.f32 %v725_v9, %v723_v8 }
  0x71   : > { %727 = vadd.xlane.f32.xlu0 %v726_v18 }
  0xfe   : > { %v728_v12 = vpop.xlane.xlu0 %727 }
  0xff   : > { %v729_v22 = vrot.slane %v728_v12, 4 }
 0x101   : > { %v730_v27 = vadd.f32 %v729_v22, %v728_v12 }
 0x103   : > { %v731_v13 = vrot.slane %v730_v27, 2 }
 0x105   : > { %v732_v15 = vadd.f32 %v731_v13, %v730_v27 }
 0x107   : > { %v733_v16 = vrot.slane %v732_v15, 1 }
 0x109   : > { %v734_v23 = vadd.f32 %v733_v16, %v732_v15 }
 0x10b   : > { %897 = vpush %v734_v23 }
 0x13c   : > { %s898_s15 = spop %897 }
 0x13d   : > { %v736_v20 = vstv %s898_s15 }
 0x13e   : > { %738 = vst.msk [vmem:[#allocation5] sm:$0x1] %vm737_vm0, %v736_v20 }
 0x13f PF: > { %p903_p11 = scmp.eq.s32.totalorder %s1028_s18, 1  ;;  %s986_s29 = smov [#allocation5]  }
 0x140   : > { %s746_s30 = sshll.u32 %s986_s29, 4  ;;  %s747_s30 = int_to_ptr.vmem [resolvable:$true] %s746_s30 }
 0x141   : > { %s931_s5 = scalar_lea.vmem %s747_s30, 16  ;;  %s937_s6 = scalar_lea.vmem %s747_s30, 32 }
 0x142   : > { %p932_p12 = scmp.ne.s32.totalorder %s747_s30, %s931_s5  ;;  %p938_p1 = scmp.lt.s32.totalorder %s747_s30, %s747_s30 }
 0x143   : > { %p939_p2 = scmp.lt.s32.totalorder %s937_s6, %s931_s5 }
 0x144   : > { %p933_p13 = pnand %p932_p12, %p903_p11 }
 0x145   : > { %p940_p3 = por %p939_p2, %p938_p1 }
 0x146   : > { %p934_p0 = pneg %p933_p13 }
 0x148   : > { %p941_p4 = pnand %p940_p3, %p934_p0 }
 0x14a   : > { %944 = shalt.err (!%p941_p4)
}
 0x14b   : > { %s945_s9 = scalar_lea.hbm %s1325_s4, 16 }
 0x14c   : > { %p946_p5 = scmp.ne.s32.totalorder %s1325_s4, %s945_s9  ;;  %p951_p8 = scmp.lt.u32.totalorder %s945_s9, %s1325_s4 }
 0x14e   : > { %p947_p6 = pnand %p946_p5, %p903_p11 }
 0x150   : > { %p948_p7 = pneg %p947_p6 }
 0x152   : > { %p953_p9 = pnand %p951_p8, %p948_p7 }
 0x154   : > { %956 = shalt.err (!%p953_p9)
}
 0x155   : > { %900 = dma.vmem_to_hbm [thread:$0]  (%p903_p11), %s747_s30, 16, %s1325_s4, [#allocation6]  }
 0x156   : > { %970 = dma.done.wait (%p903_p11), [#allocation6], 16  }
 0x157   : > { %972 = vsyncadd (%p903_p11), [#allocation6], 4294967280 }
 0x158 PF: > { %p12_p10 = scmp.ge.s32.totalorder %s1031_s19, 4   ;;  %s1327_s15 = smov %s979_s16 }
 0x159   : > { %s1328_s16 = smov %s1040_s22  ;;  %s1329_s17 = smov %s1031_s19 }
 0x15a   :  { %14 = sbr.rel (!%p12_p10) target bundleno = 2 (0x2), region = 170 }
 0x161   :  { %759 = vsyncpa [#allocation6], 1 }
 0x162   :  { %761 = vsyncpa [#allocation6 + $0x1], 1 }

</bundles_post_ra>
